<compile_context>
chip_gen: v7x
topology: tpu7x:2x2x1
jax: 0.10.0
libtpu: 0.0.40
codegen_flags: <defaults>
</compile_context>

<pallas_src>
import functools

import jax
import jax.numpy as jnp
from jax.experimental import pallas as pl
from jax.experimental.pallas import tpu as pltpu


def _softplus(x):
    # Matches torch.nn.Softplus(beta=1, threshold=20); jnp.where is a value
    # select so the untaken exp branch cannot corrupt the result.
    return jnp.where(x > 20.0, x, jnp.log1p(jnp.exp(x)))


def _naive_hyper_kernel(sid_ref, emb_ref, losses_ref, out_ref, w_scratch, *, batch):
    # Gather the embedding rows selected by sample_id. `batch` is small and
    # static, so this unrolls into `batch` dynamic-sublane loads — strictly
    # cheaper than any MXU/one-hot formulation at this size.
    for b in range(batch):
        w_scratch[pl.ds(b, 1), :] = emb_ref[pl.ds(sid_ref[b], 1), :]

    w = _softplus(w_scratch[...].astype(jnp.float32))      # (B, T), 2 EUP pushes
    x = losses_ref[...].astype(jnp.float32)                # (B, T)

    # Single fused reduction over batch AND tasks, then constant 1/B scale:
    # (w * x).mean(0).sum() == sum(w * x) / B
    out_ref[...] = jnp.sum(w * x, keepdims=True) * (1.0 / batch)


def naive_hyper_forward(emb_table, losses, sample_id):
    """emb_table: (data_num, T) f32; losses: (B, T) f32; sample_id: (B,) int32.

    Returns the scalar final_loss.
    """
    B, T = losses.shape
    N = emb_table.shape[0]

    kernel = functools.partial(_naive_hyper_kernel, batch=B)

    out = pl.pallas_call(
        kernel,
        out_shape=jax.ShapeDtypeStruct((1, 1), jnp.float32),
        grid_spec=pltpu.PrefetchScalarGridSpec(
            num_scalar_prefetch=1,                 # sample_id -> SMEM, no recompiles
            grid=(),
            in_specs=[
                pl.BlockSpec((N, T), lambda *_: (0, 0)),   # embedding table (VMEM)
                pl.BlockSpec((B, T), lambda *_: (0, 0)),   # losses (VMEM)
            ],
            out_specs=pl.BlockSpec((1, 1), lambda *_: (0, 0)),
            scratch_shapes=[pltpu.VMEM((B, T), jnp.float32)],
        ),
    )(sample_id, emb_table, losses)
    return out[0, 0]


def reference_forward(emb_table, losses, sample_id):
    w = _softplus(emb_table[sample_id])            # (B, T)
    return jnp.sum(jnp.mean(w * losses, axis=0))


if __name__ == "__main__":
    key = jax.random.PRNGKey(0)
    k_emb, k_loss, k_id = jax.random.split(key, 3)

    data_num = 16      # rows in the embedding table (dataset size)
    task_num = 4       # number of tasks (losses per sample)
    batch = 8          # minibatch size

    # torch nn.Embedding default init is N(0, 1).
    emb_table = jax.random.normal(k_emb, (data_num, task_num), dtype=jnp.float32)
    losses = jax.random.uniform(k_loss, (batch, task_num), dtype=jnp.float32)
    sample_id = jax.random.randint(k_id, (batch,), 0, data_num, dtype=jnp.int32)

    out = naive_hyper_forward(emb_table, losses, sample_id)
    out = jax.block_until_ready(out)

    ref = reference_forward(emb_table, losses, sample_id)
    assert jnp.allclose(out, ref, rtol=1e-5, atol=1e-5), (out, ref)

    print("KERNEL_OK")
</pallas_src>

<mosaic_0001>
module attributes {stable_mosaic.version = 11 : i64} {
  func.func @_naive_hyper_kernel(%arg0: memref<8xi32, #tpu.memory_space<smem>>, %arg1: memref<16x4xf32, #tpu.memory_space<vmem>>, %arg2: memref<8x4xf32, #tpu.memory_space<vmem>>, %arg3: memref<1x1xf32, #tpu.memory_space<vmem>>, %arg4: memref<8x4xf32, #tpu.memory_space<vmem>>) attributes {dimension_semantics = [], scalar_prefetch = 1 : i64, scratch_operands = 1 : i64, tpu.core_type = #tpu.core_type<tc>} {
    %c0 = arith.constant 0 : index
    %0 = memref.load %arg0[%c0] : memref<8xi32, #tpu.memory_space<smem>>
    %1 = arith.index_cast %0 : i32 to index
    %c0_0 = arith.constant 0 : index
    %2 = vector.load %arg1[%1, %c0_0] : memref<16x4xf32, #tpu.memory_space<vmem>>, vector<1x4xf32>
    %c0_1 = arith.constant 0 : index
    %c0_2 = arith.constant 0 : index
    %3 = vector.load %arg4[%c0_1, %c0_2] : memref<8x4xf32, #tpu.memory_space<vmem>>, vector<1x4xf32>
    tpu.vector_store %arg4[%c0_1, %c0_2], %2 {strides = array<i32>} : memref<8x4xf32, #tpu.memory_space<vmem>>, vector<1x4xf32>,
    %c1 = arith.constant 1 : index
    %4 = memref.load %arg0[%c1] : memref<8xi32, #tpu.memory_space<smem>>
    %5 = arith.index_cast %4 : i32 to index
    %c0_3 = arith.constant 0 : index
    %6 = vector.load %arg1[%5, %c0_3] : memref<16x4xf32, #tpu.memory_space<vmem>>, vector<1x4xf32>
    %c1_4 = arith.constant 1 : index
    %c0_5 = arith.constant 0 : index
    %7 = vector.load %arg4[%c1_4, %c0_5] : memref<8x4xf32, #tpu.memory_space<vmem>>, vector<1x4xf32>
    tpu.vector_store %arg4[%c1_4, %c0_5], %6 {strides = array<i32>} : memref<8x4xf32, #tpu.memory_space<vmem>>, vector<1x4xf32>,
    %c2 = arith.constant 2 : index
    %8 = memref.load %arg0[%c2] : memref<8xi32, #tpu.memory_space<smem>>
    %9 = arith.index_cast %8 : i32 to index
    %c0_6 = arith.constant 0 : index
    %10 = vector.load %arg1[%9, %c0_6] : memref<16x4xf32, #tpu.memory_space<vmem>>, vector<1x4xf32>
    %c2_7 = arith.constant 2 : index
    %c0_8 = arith.constant 0 : index
    %11 = vector.load %arg4[%c2_7, %c0_8] : memref<8x4xf32, #tpu.memory_space<vmem>>, vector<1x4xf32>
    tpu.vector_store %arg4[%c2_7, %c0_8], %10 {strides = array<i32>} : memref<8x4xf32, #tpu.memory_space<vmem>>, vector<1x4xf32>,
    %c3 = arith.constant 3 : index
    %12 = memref.load %arg0[%c3] : memref<8xi32, #tpu.memory_space<smem>>
    %13 = arith.index_cast %12 : i32 to index
    %c0_9 = arith.constant 0 : index
    %14 = vector.load %arg1[%13, %c0_9] : memref<16x4xf32, #tpu.memory_space<vmem>>, vector<1x4xf32>
    %c3_10 = arith.constant 3 : index
    %c0_11 = arith.constant 0 : index
    %15 = vector.load %arg4[%c3_10, %c0_11] : memref<8x4xf32, #tpu.memory_space<vmem>>, vector<1x4xf32>
    tpu.vector_store %arg4[%c3_10, %c0_11], %14 {strides = array<i32>} : memref<8x4xf32, #tpu.memory_space<vmem>>, vector<1x4xf32>,
    %c4 = arith.constant 4 : index
    %16 = memref.load %arg0[%c4] : memref<8xi32, #tpu.memory_space<smem>>
    %17 = arith.index_cast %16 : i32 to index
    %c0_12 = arith.constant 0 : index
    %18 = vector.load %arg1[%17, %c0_12] : memref<16x4xf32, #tpu.memory_space<vmem>>, vector<1x4xf32>
    %c4_13 = arith.constant 4 : index
    %c0_14 = arith.constant 0 : index
    %19 = vector.load %arg4[%c4_13, %c0_14] : memref<8x4xf32, #tpu.memory_space<vmem>>, vector<1x4xf32>
    tpu.vector_store %arg4[%c4_13, %c0_14], %18 {strides = array<i32>} : memref<8x4xf32, #tpu.memory_space<vmem>>, vector<1x4xf32>,
    %c5 = arith.constant 5 : index
    %20 = memref.load %arg0[%c5] : memref<8xi32, #tpu.memory_space<smem>>
    %21 = arith.index_cast %20 : i32 to index
    %c0_15 = arith.constant 0 : index
    %22 = vector.load %arg1[%21, %c0_15] : memref<16x4xf32, #tpu.memory_space<vmem>>, vector<1x4xf32>
    %c5_16 = arith.constant 5 : index
    %c0_17 = arith.constant 0 : index
    %23 = vector.load %arg4[%c5_16, %c0_17] : memref<8x4xf32, #tpu.memory_space<vmem>>, vector<1x4xf32>
    tpu.vector_store %arg4[%c5_16, %c0_17], %22 {strides = array<i32>} : memref<8x4xf32, #tpu.memory_space<vmem>>, vector<1x4xf32>,
    %c6 = arith.constant 6 : index
    %24 = memref.load %arg0[%c6] : memref<8xi32, #tpu.memory_space<smem>>
    %25 = arith.index_cast %24 : i32 to index
    %c0_18 = arith.constant 0 : index
    %26 = vector.load %arg1[%25, %c0_18] : memref<16x4xf32, #tpu.memory_space<vmem>>, vector<1x4xf32>
    %c6_19 = arith.constant 6 : index
    %c0_20 = arith.constant 0 : index
    %27 = vector.load %arg4[%c6_19, %c0_20] : memref<8x4xf32, #tpu.memory_space<vmem>>, vector<1x4xf32>
    tpu.vector_store %arg4[%c6_19, %c0_20], %26 {strides = array<i32>} : memref<8x4xf32, #tpu.memory_space<vmem>>, vector<1x4xf32>,
    %c7 = arith.constant 7 : index
    %28 = memref.load %arg0[%c7] : memref<8xi32, #tpu.memory_space<smem>>
    %29 = arith.index_cast %28 : i32 to index
    %c0_21 = arith.constant 0 : index
    %30 = vector.load %arg1[%29, %c0_21] : memref<16x4xf32, #tpu.memory_space<vmem>>, vector<1x4xf32>
    %c7_22 = arith.constant 7 : index
    %c0_23 = arith.constant 0 : index
    %31 = vector.load %arg4[%c7_22, %c0_23] : memref<8x4xf32, #tpu.memory_space<vmem>>, vector<1x4xf32>
    tpu.vector_store %arg4[%c7_22, %c0_23], %30 {strides = array<i32>} : memref<8x4xf32, #tpu.memory_space<vmem>>, vector<1x4xf32>,
    %c0_24 = arith.constant 0 : index
    %c0_25 = arith.constant 0 : index
    %32 = vector.load %arg4[%c0_24, %c0_25] : memref<8x4xf32, #tpu.memory_space<vmem>>, vector<8x4xf32>
    %cst = arith.constant 2.000000e+01 : f32
    %33 = vector.broadcast %cst : f32 to vector<8x4xf32>
    %34 = arith.cmpf ogt, %32, %33 : vector<8x4xf32>
    %35 = math.exp %32 : vector<8x4xf32>
    %36 = math.log1p %35 : vector<8x4xf32>
    %37 = arith.select %34, %32, %36 : vector<8x4xi1>, vector<8x4xf32>
    %c0_26 = arith.constant 0 : index
    %c0_27 = arith.constant 0 : index
    %38 = vector.load %arg2[%c0_26, %c0_27] : memref<8x4xf32, #tpu.memory_space<vmem>>, vector<8x4xf32>
    %39 = arith.mulf %37, %38 : vector<8x4xf32>
    %40 = vector.shape_cast %39 : vector<8x4xf32> to vector<1x8x4xf32>
    %cst_28 = arith.constant dense<0.000000e+00> : vector<1xf32>
    %41 = vector.multi_reduction <add>, %40, %cst_28 [1, 2] : vector<1x8x4xf32> to vector<1xf32>
    %42 = vector.shape_cast %41 : vector<1xf32> to vector<1x1x1xf32>
    %43 = vector.extract %42[0, 0, 0] : f32 from vector<1x1x1xf32>
    %44 = vector.broadcast %43 : f32 to vector<1x1xf32>
    %cst_29 = arith.constant 1.250000e-01 : f32
    %45 = vector.broadcast %cst_29 : f32 to vector<1x1xf32>
    %46 = arith.mulf %44, %45 : vector<1x1xf32>
    %c0_30 = arith.constant 0 : index
    %c0_31 = arith.constant 0 : index
    %47 = vector.load %arg3[%c0_30, %c0_31] : memref<1x1xf32, #tpu.memory_space<vmem>>, vector<1x1xf32>
    tpu.vector_store %arg3[%c0_30, %c0_31], %46 {strides = array<i32>} : memref<1x1xf32, #tpu.memory_space<vmem>>, vector<1x1xf32>,
    return
  }
}

</mosaic_0001>

<bundles_post_ra>
// kernel: tpu_custom_call.1
= control target key start
LH: loop header
LB: loop body
LE: loop exit
PB: predicated region body
PF: predicated region fallthrough
CT: control target
= control target key end

     0   :  { %s230_s0 = inlined_call_operand.vmem [shape: s32[8], index: 0, kind: input, shape index: {}]   ;;  %s231_s1 = inlined_call_operand.vmem [shape: f32[16,4], index: 1, kind: input, shape index: {}]   ;;  %s232_s2 = inlined_call_operand.vmem [shape: f32[8,4], index: 2, kind: input, shape index: {}]   ;;  %s233_s3 = inlined_call_operand.hbm [shape: f32[1,1], index: 3, kind: output, shape index: {}]  }
   0x1   :  { %s8_s14 = sshll.u32 %s230_s0, 4  ;;  %s9_s14 = int_to_ptr.vmem [resolvable:$true] %s8_s14 }
   0x2   :  { %s120_s15 = scalar_lea.vmem %s9_s14, 16  ;;  %p125_p1 = scmp.lt.s32.totalorder %s9_s14, %s9_s14 }
   0x3   :  { %p121_p0 = scmp.ne.s32.totalorder %s9_s14, %s120_s15  ;;  %p126_p2 = scmp.lt.s32.totalorder %s120_s15, %s120_s15 }
   0x5   :  { %p127_p3 = por %p126_p2, %p125_p1 }
   0x7   :  { %p128_p4 = pnand %p127_p3, %p121_p0 }
   0x9   :  { %131 = shalt.err (!%p128_p4)  }
   0xa   :  { %s158_s16 = smov [#allocation4]  }
   0xb   :  { %11 = dma.vmem_to_smem %s9_s14, 16, %s158_s16, [#allocation3] }
   0xc   :  { %154 = dma.done.wait [#allocation3], 16 }
   0xd   :  { %155 = vsyncadd [#allocation3], 4294967280 }
   0xe   :  { %13 = sfence }
   0xf   :  { %s19_s17 = sld [smem:[#allocation4]]  ;;  %s105_s18 = sld [smem:[#allocation4 + $0x1]] }
  0x10   :  { %s106_s19 = sld [smem:[#allocation4 + $0x2]]  ;;  %s107_s20 = sld [smem:[#allocation4 + $0x3]] }
  0x11   :  { %s108_s21 = sld [smem:[#allocation4 + $0x4]]  ;;  %s109_s22 = sld [smem:[#allocation4 + $0x5]] }
  0x12   :  { %14 = vsyncpa [#allocation6], 0  ;;  %s110_s0 = sld [smem:[#allocation4 + $0x6]]  ;;  %s111_s23 = sld [smem:[#allocation4 + $0x7]]  ;;  %vm22_vm0 = vcmask 24576   ;;  %v66_v18 = vld [vmem:[%s232_s2] sm:$0xff] }
  0x13   :  { %vm68_vm3 = vcmask 31744   ;;  %vm81_vm4 = vcmask 0  }
  0x15   :  { %s20_s26 = scalar_lea.vmem %s231_s1, %s19_s17  ;;  %s25_s29 = scalar_lea.vmem %s231_s1, %s105_s18 }
  0x16   :  { %v21_v0 = vld [vmem:[%s20_s26] sm:$0x1]  ;;  %s29_s5 = scalar_lea.vmem %s231_s1, %s106_s19  ;;  %s33_s8 = scalar_lea.vmem %s231_s1, %s107_s20 }
  0x17   :  { %v26_v1 = vld [vmem:[%s25_s29] sm:$0x1]  ;;  %23 = vst.msk [vmem:[#allocation2] sm:$0x1] %vm22_vm0, %v21_v0  ;;  %s37_s11 = scalar_lea.vmem %s231_s1, %s108_s21  ;;  %s41_s14 = scalar_lea.vmem %s231_s1, %s109_s22 }
  0x18   :  { %27 = vst.msk [vmem:[#allocation2 + $0x1] sm:$0x1] %vm22_vm0, %v26_v1  ;;  %v30_v2 = vld [vmem:[%s29_s5] sm:$0x1]  ;;  %s45_s17 = scalar_lea.vmem %s231_s1, %s110_s0  ;;  %s49_s20 = scalar_lea.vmem %s231_s1, %s111_s23 }
  0x19   :  { %v34_v3 = vld [vmem:[%s33_s8] sm:$0x1]  ;;  %31 = vst.msk [vmem:[#allocation2 + $0x2] sm:$0x1] %vm22_vm0, %v30_v2  ;;  %s159_s22 = smov [#allocation5]  }
  0x1a   :  { %35 = vst.msk [vmem:[#allocation2 + $0x3] sm:$0x1] %vm22_vm0, %v34_v3  ;;  %v38_v4 = vld [vmem:[%s37_s11] sm:$0x1]  ;;  %s89_s0 = sshll.u32 %s159_s22, 4  ;;  %s90_s0 = int_to_ptr.vmem [resolvable:$true] %s89_s0 }
  0x1b   :  { %v42_v5 = vld [vmem:[%s41_s14] sm:$0x1]  ;;  %39 = vst.msk [vmem:[#allocation2 + $0x4] sm:$0x1] %vm22_vm0, %v38_v4  ;;  %s132_s2 = scalar_lea.vmem %s90_s0, 16  ;;  %s136_s24 = scalar_lea.vmem %s90_s0, 32 }
  0x1c   :  { %43 = vst.msk [vmem:[#allocation2 + $0x5] sm:$0x1] %vm22_vm0, %v42_v5  ;;  %v46_v6 = vld [vmem:[%s45_s17] sm:$0x1]  ;;  %p133_p5 = scmp.ne.s32.totalorder %s90_s0, %s132_s2  ;;  %p137_p6 = scmp.lt.s32.totalorder %s90_s0, %s90_s0 }
  0x1d   :  { %v50_v7 = vld [vmem:[%s49_s20] sm:$0x1]  ;;  %47 = vst.msk [vmem:[#allocation2 + $0x6] sm:$0x1] %vm22_vm0, %v46_v6  ;;  %p138_p7 = scmp.lt.s32.totalorder %s136_s24, %s132_s2 }
  0x1e   :  { %51 = vst.msk [vmem:[#allocation2 + $0x7] sm:$0x1] %vm22_vm0, %v50_v7 }
  0x1f   :  { %p139_p8 = por %p138_p7, %p137_p6 }
  0x21   :  { %p140_p9 = pnand %p139_p8, %p133_p5 }
  0x25   :  { %v52_v8 = vld [vmem:[#allocation2] sm:$0xff] }
  0x26   :  { %v54_v9 = vmul.f32 1.442695, %v52_v8  ;;  %vm53_vm2 = vcmp.gt.f32.partialorder %v52_v8, 20.0 }
  0x28   :  { %116 = vpow2.f32 %v54_v9 }
  0x32   :  { %v117_v10 = vpop.eup %116 }
  0x33   :  { %v56_v11 = vadd.f32 1.0, %v117_v10  ;;  %v59_v12 = vmul.f32 -0.5, %v117_v10  ;;  %v62_v14 = vand.u32 2147483647, %v117_v10 }
  0x35   :  { %118 = vlog2.f32 %v56_v11  ;;  %v60_v13 = vadd.f32 1.0, %v59_v12  ;;  %vm63_vm1 = vcmp.lt.f32.partialorder %v62_v14, 0.0004427343 }
  0x37   :  { %v61_v15 = vmul.f32 %v117_v10, %v60_v13 }
  0x3f   :  { %v119_v16 = vpop.eup %118 }
  0x40   :  { %v58_v17 = vmul.f32 0.6931472, %v119_v16 }
  0x42   :  { %v64_v19 = vsel %vm63_vm1, %v61_v15, %v58_v17 }
  0x43   :  { %v65_v20 = vsel %vm53_vm2, %v52_v8, %v64_v19 }
  0x44   :  { %v67_v21 = vmul.f32 %v66_v18, %v65_v20 }
  0x46   :  { %v69_v22 = vsel %vm68_vm3, %v67_v21, 0.0 }
  0x47   :  { %70 = vadd.xlane.f32.xlu0 %v69_v22 }
  0xd4   :  { %v71_v23 = vpop.xlane.xlu0 %70 }
  0xd5   :  { %v72_v24 = vrot.slane %v71_v23, 4 }
  0xd7   :  { %v73_v25 = vadd.f32 %v72_v24, %v71_v23 }
  0xd9   :  { %v74_v26 = vrot.slane %v73_v25, 2 }
  0xdb   :  { %v75_v27 = vadd.f32 %v74_v26, %v73_v25 }
  0xdd   :  { %v76_v28 = vrot.slane %v75_v27, 1 }
  0xdf   :  { %v77_v29 = vadd.f32 %v76_v28, %v75_v27 }
  0xe1   :  { %112 = vpush %v77_v29 }
 0x112   :  { %s113_s23 = spop %112 }
 0x113   :  { %v79_v30 = vstv %s113_s23 }
 0x114   :  { %v80_v31 = vmul.f32 0.125, %v79_v30 }
 0x116   :  { %82 = vst.msk [vmem:[#allocation5] sm:$0x1] %vm81_vm4, %v80_v31 }
 0x117   :  { %143 = shalt.err (!%p140_p9)
}
 0x118   :  { %s144_s27 = scalar_lea.hbm %s233_s3, 16 }
 0x119   :  { %p145_p10 = scmp.ne.s32.totalorder %s233_s3, %s144_s27  ;;  %p148_p11 = scmp.lt.u32.totalorder %s144_s27, %s233_s3 }
 0x11b   :  { %p150_p12 = pnand %p148_p11, %p145_p10 }
 0x11d   :  { %153 = shalt.err (!%p150_p12)
}
 0x11e   :  { %92 = dma.vmem_to_hbm [thread:$0]  %s90_s0, 16, %s233_s3, [#allocation6]  }
 0x11f   :  { %156 = dma.done.wait [#allocation6], 16  }
 0x120   :  { %157 = vsyncadd [#allocation6], 4294967280 }
 0x121   :  { %96 = vsyncpa [#allocation6], 1 }

</bundles_post_ra>
